<compile_context>
chip_gen: v6e
topology: v6e:2x2x1
jax: 0.10.0
libtpu: 0.0.40
codegen_flags: <defaults>
</compile_context>

<pallas_src>
import jax
import jax.numpy as jnp
from jax.experimental import pallas as pl
from jax.experimental.pallas import tpu as pltpu

# Module hyper-parameters (FocalLoss.__init__ defaults)
ALPHA = 1.0
GAMMA = 2                      # int exponent -> lax.integer_pow (a multiply)
LS = 0.05
CLASSES = 6
ON_TGT = 1.0 - LS + LS / CLASSES   # label-smoothed target value at the true class
OFF_TGT = LS / CLASSES             # ... at every other class

MAX_TILE_N = 65536             # lanes per tile (multiple of 128); ~10 MiB VMEM


def _round_up(x: int, m: int) -> int:
    return ((x + m - 1) // m) * m


def _default_num_slices() -> int:
    """2 on parts with 2 TensorCores per device (v7x / v4 / v5p), else 1."""
    try:
        kind = jax.devices()[0].device_kind.lower()
    except Exception:
        return 1
    if "lite" in kind or "v5e" in kind or "v6e" in kind:
        return 1
    if "v4" in kind or "v5p" in kind or "7" in kind:
        return 2
    return 1


def _make_focal_loss_kernel(*, n_valid, tile_n, tiles_per_slice, tiles_total,
                            inv_denom, need_mask):
    """Builds the kernel, closing over compile-time tiling constants."""

    def kernel(x_ref, t_ref, out_ref, acc_ref):
        # x_ref  : (CLASSES, tile_n) logits (caller dtype), lane-dense
        # t_ref  : (1, tile_n) int32 class indices
        # out_ref: (1, 8, 128) f32 per-slice partial (already scaled by 1/(N*C))
        # acc_ref: (1, tile_n) f32 running per-lane partial sum
        s = pl.program_id(0)
        i = pl.program_id(1)

        @pl.when(i == 0)
        def _init():
            acc_ref[...] = jnp.zeros_like(acc_ref)

        x = x_ref[...].astype(jnp.float32)          # (C, tile_n), math in f32
        tgt = t_ref[...]                            # (1, tile_n) int32
        c, tn = x.shape

        # one_hot(targets) + label smoothing folded directly into x*t.
        cls_ids = jax.lax.broadcasted_iota(jnp.int32, (c, tn), 0)
        xt = jnp.where(cls_ids == tgt, x * ON_TGT, x * OFF_TGT)

        # Numerically stable BCE-with-logits, reduction='none'.
        relu_x = jnp.maximum(x, 0.0)
        bce = relu_x - xt + jnp.log1p(jnp.exp(-jnp.abs(x)))
        pt = jnp.exp(-bce)                          # exactly as the reference
        f_loss = ALPHA * (1.0 - pt) ** GAMMA * bce

        # Class-axis (sublane) reduce per tile; lane reduce deferred to finalize.
        lane_sum = jnp.sum(f_loss, axis=0, keepdims=True)   # (1, tile_n)

        if need_mask:
            # Only the globally-last tile is ragged (its out-of-bounds lanes
            # read unspecified HBM data); mask that tile's per-lane sum and
            # skip the mask entirely on full tiles.
            is_ragged = (s * tiles_per_slice + i) == (tiles_total - 1)

            @pl.when(is_ragged)
            def _acc_ragged():
                col = ((tiles_total - 1) * tile_n
                       + jax.lax.broadcasted_iota(jnp.int32, (1, tn), 1))
                acc_ref[...] += jnp.where(col < n_valid, lane_sum, 0.0)

            @pl.when(jnp.logical_not(is_ragged))
            def _acc_full():
                acc_ref[...] += lane_sum
        else:
            acc_ref[...] += lane_sum

        @pl.when(i == tiles_per_slice - 1)
        def _finalize():
            # Scaled by the GLOBAL 1/(N*C); the host just adds the slices.
            total = jnp.sum(acc_ref[...]) * inv_denom
            out_ref[...] = jnp.zeros(out_ref.shape, out_ref.dtype) + total

    return kernel


def focal_loss(inputs, targets, *, max_tile_n: int = MAX_TILE_N,
               num_slices: int | None = None, transfer_dtype=None,
               transposed: bool = False, logits_buffer_count: int | None = None):
    """Mean focal loss.

    inputs : (N, CLASSES) float logits, or (CLASSES, N) if transposed=True.
    targets: (N,) integer class ids.
    transfer_dtype: e.g. jnp.bfloat16 to halve the transpose copy and the
        kernel's HBM traffic (cast happens BEFORE the transpose; in-kernel math
        stays f32).
    logits_buffer_count: e.g. 3 on bandwidth-tight v5e for deeper pipelining.
    """
    if transfer_dtype is not None and inputs.dtype != transfer_dtype:
        inputs = inputs.astype(transfer_dtype)      # before the transpose copy

    if transposed:
        c, n = inputs.shape
        x_t = inputs
    else:
        n, c = inputs.shape
        x_t = jnp.transpose(inputs)                 # (C, N): batch on lanes
    assert c == CLASSES

    tgt = targets.astype(jnp.int32).reshape(1, n)

    if num_slices is None:
        num_slices = _default_num_slices()

    # Tiling over the batch (lane) axis.  No jnp.pad: the ragged tail is
    # masked in-kernel.
    max_tile_n = _round_up(max(int(max_tile_n), 128), 128)
    if n <= max_tile_n:
        tile_n = n                 # single full-extent block, no mask needed
        num_slices = 1
        tiles_per_slice = 1
    else:
        tile_n = max_tile_n
        tiles_total = pl.cdiv(n, tile_n)
        if num_slices > 1 and tiles_total % num_slices != 0:
            num_slices = 1         # keep every grid block at least partly valid
        tiles_per_slice = tiles_total // num_slices
    tiles_total = num_slices * tiles_per_slice
    need_mask = (tiles_total * tile_n) != n

    kernel = _make_focal_loss_kernel(
        n_valid=n, tile_n=tile_n, tiles_per_slice=tiles_per_slice,
        tiles_total=tiles_total, inv_denom=1.0 / (n * CLASSES),
        need_mask=need_mask)

    def col_map(s, i):
        return (0, s * tiles_per_slice + i)

    logits_spec_kwargs = {}
    if logits_buffer_count is not None:
        logits_spec_kwargs["pipeline_mode"] = pl.Buffered(logits_buffer_count)

    grid_spec = pltpu.PrefetchScalarGridSpec(
        num_scalar_prefetch=0,
        grid=(num_slices, tiles_per_slice),
        in_specs=[
            pl.BlockSpec((CLASSES, tile_n), col_map, **logits_spec_kwargs),
            pl.BlockSpec((1, tile_n), col_map),
        ],
        out_specs=pl.BlockSpec((1, 8, 128), lambda s, i: (s, 0, 0)),
        scratch_shapes=[pltpu.VMEM((1, tile_n), jnp.float32)],
    )

    itemsize = jnp.dtype(x_t.dtype).itemsize
    cost = pl.CostEstimate(
        flops=20 * n * CLASSES,
        transcendentals=3 * n * CLASSES,
        bytes_accessed=n * CLASSES * itemsize + n * 4 + num_slices * 8 * 128 * 4)

    partials = pl.pallas_call(
        kernel,
        out_shape=jax.ShapeDtypeStruct((num_slices, 8, 128), jnp.float32),
        grid_spec=grid_spec,
        compiler_params=pltpu.CompilerParams(
            dimension_semantics=("parallel", "arbitrary")),
        cost_estimate=cost,
    )(x_t, tgt)

    # Each slice's partial is already divided by the global N*C; just add them.
    return jnp.sum(partials[:, 0, 0])


def focal_loss_ref(inputs, targets):
    """Pure-JAX reference mirroring the PyTorch forward."""
    onehot = jax.nn.one_hot(targets, CLASSES, dtype=jnp.float32)
    t = (1.0 - LS) * onehot + LS / CLASSES
    x = inputs.astype(jnp.float32)
    bce = jnp.maximum(x, 0.0) - x * t + jnp.log1p(jnp.exp(-jnp.abs(x)))
    pt = jnp.exp(-bce)
    f_loss = ALPHA * (1.0 - pt) ** GAMMA * bce
    return jnp.mean(f_loss)


if __name__ == "__main__":
    key = jax.random.PRNGKey(0)
    k1, k2 = jax.random.split(key)

    # Small, not a multiple of 128 -> exercises the single full-extent block.
    N = 300
    inputs = jax.random.normal(k1, (N, CLASSES), dtype=jnp.float32)
    targets = jax.random.randint(k2, (N,), 0, CLASSES, dtype=jnp.int32)
    ref = focal_loss_ref(inputs, targets)

    # 1) Default single-tile path (block == full array, no masking).
    loss = focal_loss(inputs, targets)
    jax.block_until_ready(loss)
    assert jnp.allclose(loss, ref, atol=1e-5, rtol=1e-5), (loss, ref)

    # 2) Multi-tile ragged path (tile_n=128, 3 tiles, last one masked, no pad).
    loss_tiled = focal_loss(inputs, targets, max_tile_n=128)
    jax.block_until_ready(loss_tiled)
    assert jnp.allclose(loss_tiled, ref, atol=1e-5, rtol=1e-5), (loss_tiled, ref)

    # 3) Two-slice path with a ragged tail (N=700 -> 6 tiles, 2 slices x 3).
    N2 = 700
    inputs2 = jax.random.normal(k1, (N2, CLASSES), dtype=jnp.float32)
    targets2 = jax.random.randint(k2, (N2,), 0, CLASSES, dtype=jnp.int32)
    ref2 = focal_loss_ref(inputs2, targets2)
    loss2 = focal_loss(inputs2, targets2, max_tile_n=128, num_slices=2)
    jax.block_until_ready(loss2)
    assert jnp.allclose(loss2, ref2, atol=1e-5, rtol=1e-5), (loss2, ref2)

    # 4) bf16 HBM transfer (halves transpose + DMA bytes); compare against a
    #    reference computed from the same bf16-rounded logits (math is f32 in
    #    both, so the tolerance stays tight).
    ref_bf16 = focal_loss_ref(inputs.astype(jnp.bfloat16).astype(jnp.float32),
                              targets)
    loss_bf16 = focal_loss(inputs, targets, transfer_dtype=jnp.bfloat16)
    jax.block_until_ready(loss_bf16)
    assert jnp.allclose(loss_bf16, ref_bf16, atol=1e-5, rtol=1e-5), (loss_bf16,
                                                                     ref_bf16)

    print("KERNEL_OK")
</pallas_src>

<mosaic_0001>
module attributes {stable_mosaic.version = 11 : i64} {
  func.func @kernel(%arg0: i32, %arg1: i32, %arg2: memref<6x300xf32, #tpu.memory_space<vmem>>, %arg3: memref<1x300xi32, #tpu.memory_space<vmem>>, %arg4: memref<1x8x128xf32, #tpu.memory_space<vmem>>, %arg5: memref<1x300xf32, #tpu.memory_space<vmem>>) attributes {dimension_semantics = [#tpu.dimension_semantics<parallel>, #tpu.dimension_semantics<arbitrary>], iteration_bounds = array<i64: 1, 1>, scalar_prefetch = 0 : i64, scratch_operands = 1 : i64, tpu.core_type = #tpu.core_type<tc>, window_params = [{transform_indices = @transform_0, window_bounds = array<i64: 6, 300>}, {transform_indices = @transform_1, window_bounds = array<i64: 1, 300>}, {transform_indices = @transform_2, window_bounds = array<i64: 1, 8, 128>}]} {
    %c0_i32 = arith.constant 0 : i32
    %0 = arith.cmpi eq, %arg1, %c0_i32 : i32
    %1 = arith.extui %0 : i1 to i32
    %c0_i32_0 = arith.constant 0 : i32
    %2 = arith.cmpi ne, %1, %c0_i32_0 : i32
    scf.if %2 {
      %cst_17 = arith.constant 0.000000e+00 : f32
      %39 = vector.broadcast %cst_17 : f32 to vector<1x300xf32>
      %c0_18 = arith.constant 0 : index
      %c0_19 = arith.constant 0 : index
      %40 = vector.load %arg5[%c0_18, %c0_19] : memref<1x300xf32, #tpu.memory_space<vmem>>, vector<1x300xf32>
      tpu.vector_store %arg5[%c0_18, %c0_19], %39 {strides = array<i32>} : memref<1x300xf32, #tpu.memory_space<vmem>>, vector<1x300xf32>,
    } else {
    }
    %c0 = arith.constant 0 : index
    %c0_1 = arith.constant 0 : index
    %3 = vector.load %arg2[%c0, %c0_1] : memref<6x300xf32, #tpu.memory_space<vmem>>, vector<6x300xf32>
    %c0_2 = arith.constant 0 : index
    %c0_3 = arith.constant 0 : index
    %4 = vector.load %arg3[%c0_2, %c0_3] : memref<1x300xi32, #tpu.memory_space<vmem>>, vector<1x300xi32>
    %5 = tpu.iota {dimensions = array<i32: 0>} : vector<6x300xi32>
    %6 = vector.broadcast %4 : vector<1x300xi32> to vector<6x300xi32>
    %7 = arith.cmpi eq, %5, %6 : vector<6x300xi32>
    %cst = arith.constant 0.958333313 : f32
    %8 = vector.broadcast %cst : f32 to vector<6x300xf32>
    %9 = arith.mulf %3, %8 : vector<6x300xf32>
    %cst_4 = arith.constant 0.00833333377 : f32
    %10 = vector.broadcast %cst_4 : f32 to vector<6x300xf32>
    %11 = arith.mulf %3, %10 : vector<6x300xf32>
    %12 = arith.select %7, %9, %11 : vector<6x300xi1>, vector<6x300xf32>
    %cst_5 = arith.constant 0.000000e+00 : f32
    %13 = vector.broadcast %cst_5 : f32 to vector<6x300xf32>
    %14 = arith.maximumf %3, %13 : vector<6x300xf32>
    %15 = arith.subf %14, %12 : vector<6x300xf32>
    %16 = math.absf %3 : vector<6x300xf32>
    %cst_6 = arith.constant 0.000000e+00 : f32
    %17 = vector.broadcast %cst_6 : f32 to vector<6x300xf32>
    %18 = arith.subf %17, %16 : vector<6x300xf32>
    %19 = math.exp %18 : vector<6x300xf32>
    %20 = math.log1p %19 : vector<6x300xf32>
    %21 = arith.addf %15, %20 : vector<6x300xf32>
    %cst_7 = arith.constant 0.000000e+00 : f32
    %22 = vector.broadcast %cst_7 : f32 to vector<6x300xf32>
    %23 = arith.subf %22, %21 : vector<6x300xf32>
    %24 = math.exp %23 : vector<6x300xf32>
    %cst_8 = arith.constant 1.000000e+00 : f32
    %25 = vector.broadcast %cst_8 : f32 to vector<6x300xf32>
    %26 = arith.subf %25, %24 : vector<6x300xf32>
    %27 = arith.mulf %26, %26 : vector<6x300xf32>
    %cst_9 = arith.constant 1.000000e+00 : f32
    %28 = vector.broadcast %cst_9 : f32 to vector<6x300xf32>
    %29 = arith.mulf %28, %27 : vector<6x300xf32>
    %30 = arith.mulf %29, %21 : vector<6x300xf32>
    %cst_10 = arith.constant dense<0.000000e+00> : vector<300xf32>
    %31 = vector.multi_reduction <add>, %30, %cst_10 [0] : vector<6x300xf32> to vector<300xf32>
    %32 = vector.shape_cast %31 : vector<300xf32> to vector<1x300xf32>
    %c0_11 = arith.constant 0 : index
    %c0_12 = arith.constant 0 : index
    %33 = vector.load %arg5[%c0_11, %c0_12] : memref<1x300xf32, #tpu.memory_space<vmem>>, vector<1x300xf32>
    %34 = arith.addf %33, %32 : vector<1x300xf32>
    %c0_13 = arith.constant 0 : index
    %c0_14 = arith.constant 0 : index
    %35 = vector.load %arg5[%c0_13, %c0_14] : memref<1x300xf32, #tpu.memory_space<vmem>>, vector<1x300xf32>
    tpu.vector_store %arg5[%c0_13, %c0_14], %34 {strides = array<i32>} : memref<1x300xf32, #tpu.memory_space<vmem>>, vector<1x300xf32>,
    %c0_i32_15 = arith.constant 0 : i32
    %36 = arith.cmpi eq, %arg1, %c0_i32_15 : i32
    %37 = arith.extui %36 : i1 to i32
    %c0_i32_16 = arith.constant 0 : i32
    %38 = arith.cmpi ne, %37, %c0_i32_16 : i32
    scf.if %38 {
      %c0_17 = arith.constant 0 : index
      %c0_18 = arith.constant 0 : index
      %39 = vector.load %arg5[%c0_17, %c0_18] : memref<1x300xf32, #tpu.memory_space<vmem>>, vector<1x300xf32>
      %40 = vector.shape_cast %39 : vector<1x300xf32> to vector<1x1x300xf32>
      %cst_19 = arith.constant dense<0.000000e+00> : vector<1xf32>
      %41 = vector.multi_reduction <add>, %40, %cst_19 [1, 2] : vector<1x1x300xf32> to vector<1xf32>
      %42 = vector.shape_cast %41 : vector<1xf32> to vector<1x1x1xf32>
      %43 = vector.extract %42[0, 0, 0] : f32 from vector<1x1x1xf32>
      %cst_20 = arith.constant 5.55555569E-4 : f32
      %44 = arith.mulf %43, %cst_20 : f32
      %cst_21 = arith.constant 0.000000e+00 : f32
      %45 = vector.broadcast %cst_21 : f32 to vector<1x8x128xf32>
      %46 = vector.broadcast %44 : f32 to vector<1x8x128xf32>
      %47 = arith.addf %45, %46 : vector<1x8x128xf32>
      %c0_22 = arith.constant 0 : index
      %c0_23 = arith.constant 0 : index
      %c0_24 = arith.constant 0 : index
      %48 = vector.load %arg4[%c0_22, %c0_23, %c0_24] : memref<1x8x128xf32, #tpu.memory_space<vmem>>, vector<1x8x128xf32>
      tpu.vector_store %arg4[%c0_22, %c0_23, %c0_24], %47 {strides = array<i32>} : memref<1x8x128xf32, #tpu.memory_space<vmem>>, vector<1x8x128xf32>,
    } else {
    }
    return
  }
  func.func @transform_0(%arg0: i32, %arg1: i32) -> (i32, i32) {
    %c1_i32 = arith.constant 1 : i32
    %0 = arith.muli %arg0, %c1_i32 : i32
    %1 = arith.addi %0, %arg1 : i32
    %c0_i32 = arith.constant 0 : i32
    %c0_i32_0 = arith.constant 0 : i32
    return %c0_i32, %1 : i32, i32
  }
  func.func @transform_1(%arg0: i32, %arg1: i32) -> (i32, i32) {
    %c1_i32 = arith.constant 1 : i32
    %0 = arith.muli %arg0, %c1_i32 : i32
    %1 = arith.addi %0, %arg1 : i32
    %c0_i32 = arith.constant 0 : i32
    %c0_i32_0 = arith.constant 0 : i32
    return %c0_i32, %1 : i32, i32
  }
  func.func @transform_2(%arg0: i32, %arg1: i32) -> (i32, i32, i32) {
    %c0_i32 = arith.constant 0 : i32
    %c0_i32_0 = arith.constant 0 : i32
    %c0_i32_1 = arith.constant 0 : i32
    return %arg0, %c0_i32, %c0_i32_0 : i32, i32, i32
  }
}

</mosaic_0001>

<bundles_post_ra>
// kernel: tpu_custom_call.1
= control target key start
LH: loop header
LB: loop body
LE: loop exit
PB: predicated region body
PF: predicated region fallthrough
CT: control target
= control target key end

     0   :  { %7 = vsyncpa [#allocation4], 0  ;;  %s421_s0 = inlined_call_operand.hbm [shape: f32[6,300], index: 0, kind: input, shape index: {}]   ;;  %s422_s1 = inlined_call_operand.hbm [shape: s32[1,300], index: 1, kind: input, shape index: {}]   ;;  %s423_s2 = inlined_call_operand.hbm [shape: f32[1,8,128], index: 2, kind: output, shape index: {}]  }
   0x1   :  { %8 = vsyncpa [#allocation7], 0 }
   0x2   :  { %9 = vsyncpa [#allocation5], 0  ;;  %s357_s9 = smov [#allocation3]   ;;  %s358_s11 = smov [#allocation6]  }
   0x3   :  { %s20_s10 = sshll.u32 %s357_s9, 4  ;;  %s34_s12 = sshll.u32 %s358_s11, 4  ;;  %s21_s10 = int_to_ptr.vmem [resolvable:$true] %s20_s10  ;;  %s35_s12 = int_to_ptr.vmem [resolvable:$true] %s34_s12 }
   0x4   :  { %s299_s13 = scalar_lea.vmem %s21_s10, 384  ;;  %p304_p1 = scmp.lt.s32.totalorder %s21_s10, %s21_s10 }
   0x5   :  { %p300_p0 = scmp.ne.s32.totalorder %s21_s10, %s299_s13  ;;  %p305_p2 = scmp.lt.s32.totalorder %s299_s13, %s299_s13 }
   0x7   :  { %p306_p3 = por %p305_p2, %p304_p1 }
   0x9   :  { %p307_p4 = pnand %p306_p3, %p300_p0 }
   0xb   :  { %310 = shalt.err (!%p307_p4)
}
   0xc   :  { %23 = dma.hbm_to_vmem [thread:$0]  %s421_s0, 384, %s21_s10, [#allocation4]  }
   0xd   :  { %s319_s16 = scalar_lea.vmem %s35_s12, 48  ;;  %s323_s17 = scalar_lea.vmem %s35_s12, 64 }
   0xe   :  { %p320_p5 = scmp.ne.s32.totalorder %s35_s12, %s319_s16  ;;  %p324_p6 = scmp.lt.s32.totalorder %s35_s12, %s35_s12 }
   0xf   :  { %p325_p7 = scmp.lt.s32.totalorder %s323_s17, %s319_s16 }
  0x11   :  { %p326_p8 = por %p325_p7, %p324_p6 }
  0x13   :  { %p327_p9 = pnand %p326_p8, %p320_p5 }
  0x15   :  { %330 = shalt.err (!%p327_p9)
}
  0x16   :  { %37 = dma.hbm_to_vmem [thread:$0]  %s422_s1, 48, %s35_s12, [#allocation7]  }
  0x17   :  { %351 = dma.done.wait [#allocation4], 384  }
  0x18   :  { %352 = vsyncadd [#allocation4], 4294966912 }
  0x19   :  { %353 = dma.done.wait [#allocation7], 48  }
  0x1a   :  { %354 = vsyncadd [#allocation7], 4294967248  ;;  %v52_v0 = vlaneseq  ;;  %v359_v2 = vmov 0.0   ;;  %v57_v3 = vld [vmem:[#allocation3] sm:$0x3f]  ;;  %vm153_vm7 = vcmask 1045504  }
  0x1b   :  { %v58_v4 = vld [vmem:[#allocation3 + $0x8] sm:$0x3f]  ;;  %v389_v5 = vld [vmem:[#allocation3 + $0x10] sm:$0x3f]  ;;  %v93_v6 = vand.u32 2147483647, %v57_v3 }
  0x1c   :  { %vm383_vm0 = vcmp.lt.s32.totalorder %v52_v0, 300  ;;  %v94_v7 = vand.u32 2147483647, %v58_v4  ;;  %v95_v8 = vand.u32 2147483647, %v389_v5  ;;  %v392_v15 = vshrl.u32 %v52_v0, 7 }
  0x1d   :  { %56 = vst.msk [vmem:[#allocation2] sm:$0x7] %vm383_vm0, %v359_v2  ;;  %v96_v9 = vsub.f32 0.0, %v93_v6  ;;  %v60_v22 = vld [vmem:[#allocation6] sm:$0x7]  ;;  %v87_v39 = vmax.f32 %v57_v3, 0.0 }
  0x1e   :  { %v97_v10 = vsub.f32 0.0, %v94_v7  ;;  %v98_v11 = vsub.f32 0.0, %v95_v8  ;;  %v65_v20 = vsub.s32 0, %v392_v15  ;;  %v69_v23 = vsub.s32 1, %v392_v15  ;;  %s361_s0 = smov [#allocation8]  }
  0x1f   :  { %v99_v12 = vmul.f32 1.442695, %v96_v9  ;;  %v73_v25 = vsub.s32 2, %v392_v15  ;;  %v78_v31 = vmul.f32 0.9583333, %v57_v3  ;;  %v88_v43 = vmax.f32 %v58_v4, 0.0 }
  0x20   :  { %v101_v13 = vmul.f32 1.442695, %v97_v10  ;;  %v103_v14 = vmul.f32 1.442695, %v98_v11  ;;  %v66_v26 = vrot.slane %v60_v22, %v65_v20  ;;  %v70_v27 = vrot.slane %v60_v22, %v69_v23  ;;  %s256_s1 = sshll.u32 %s361_s0, 4  ;;  %s257_s1 = int_to_ptr.vmem [resolvable:$true] %s256_s1 }
  0x21   :  { %273 = vpow2.f32 %v99_v12  ;;  %v74_v29 = vrot.slane %v60_v22, %v73_v25  ;;  %v81_v32 = vmul.f32 0.008333334, %v57_v3  ;;  %v79_v34 = vmul.f32 0.9583333, %v58_v4  ;;  %s331_s22 = scalar_lea.vmem %s257_s1, 128  ;;  %p336_p11 = scmp.lt.s32.totalorder %s257_s1, %s257_s1 }
  0x22   :  { %275 = vpow2.f32 %v101_v13  ;;  %vm75_vm1 = vcmp.eq.s32.totalorder %v392_v15, %v66_v26  ;;  %v82_v35 = vmul.f32 0.008333334, %v58_v4  ;;  %vm76_vm2 = vcmp.eq.s32.totalorder %v392_v15, %v70_v27  ;;  %p332_p10 = scmp.ne.s32.totalorder %s257_s1, %s331_s22  ;;  %p337_p12 = scmp.lt.s32.totalorder %s331_s22, %s331_s22 }
  0x23   :  { %277 = vpow2.f32 %v103_v14  ;;  %v80_v36 = vmul.f32 0.9583333, %v389_v5  ;;  %v83_v37 = vmul.f32 0.008333334, %v389_v5  ;;  %vm77_vm3 = vcmp.eq.s32.totalorder %v392_v15, %v74_v29 }
  0x24   :  { %v84_v42 = vsel %vm75_vm1, %v78_v31, %v81_v32  ;;  %v85_v46 = vsel %vm76_vm2, %v79_v34, %v82_v35  ;;  %v89_v47 = vmax.f32 %v389_v5, 0.0  ;;  %vm168_vm8 = vcmask 357376   ;;  %p338_p13 = por %p337_p12, %p336_p11 }
  0x25   :  { %v86_v49 = vsel %vm77_vm3, %v80_v36, %v83_v37  ;;  %v90_v52 = vsub.f32 %v87_v39, %v84_v42  ;;  %v91_v55 = vsub.f32 %v88_v43, %v85_v46  ;;  %v360_v34 = vmov 1966171168  }
  0x26   :  { %v92_v59 = vsub.f32 %v89_v47, %v86_v49  ;;  %v182_v35 = vunpack.c.l.s4 %v360_v34  ;;  %vm230_vm9 = vcmask 1040384   ;;  %vm234_vm10 = vcmask 352256   ;;  %p339_p0 = pnand %p338_p13, %p332_p10 }
  0x28   :  { %v183_v42 = vunpack.c.0.s8 %v182_v35 }
  0x2a   :  { %v186_v49 = vsub.s32 %v183_v42, %v392_v15 }
  0x2e   :  { %v274_v16 = vpop.eup %273 }
  0x2f   :  { %v276_v17 = vpop.eup %275  ;;  %v105_v18 = vadd.f32 1.0, %v274_v16  ;;  %v108_v28 = vmul.f32 -0.5, %v274_v16  ;;  %v111_v40 = vand.u32 2147483647, %v274_v16 }
  0x30   :  { %v278_v19 = vpop.eup %277  ;;  %v114_v21 = vadd.f32 1.0, %v276_v17  ;;  %v117_v30 = vmul.f32 -0.5, %v276_v17  ;;  %v120_v44 = vand.u32 2147483647, %v276_v17 }
  0x31   :  { %279 = vlog2.f32 %v105_v18  ;;  %v123_v24 = vadd.f32 1.0, %v278_v19  ;;  %v126_v33 = vmul.f32 -0.5, %v278_v19  ;;  %v109_v38 = vadd.f32 1.0, %v108_v28 }
  0x32   :  { %281 = vlog2.f32 %v114_v21  ;;  %v118_v41 = vadd.f32 1.0, %v117_v30  ;;  %v129_v48 = vand.u32 2147483647, %v278_v19  ;;  %vm112_vm4 = vcmp.lt.f32.partialorder %v111_v40, 0.0004427343 }
  0x33   :  { %283 = vlog2.f32 %v123_v24  ;;  %v127_v45 = vadd.f32 1.0, %v126_v33  ;;  %v110_v50 = vmul.f32 %v274_v16, %v109_v38  ;;  %vm121_vm5 = vcmp.lt.f32.partialorder %v120_v44, 0.0004427343 }
  0x34   :  { %v119_v53 = vmul.f32 %v276_v17, %v118_v41  ;;  %vm130_vm6 = vcmp.lt.f32.partialorder %v129_v48, 0.0004427343 }
  0x35   :  { %v128_v57 = vmul.f32 %v278_v19, %v127_v45 }
  0x3e   :  { %v280_v51 = vpop.eup %279 }
  0x3f   :  { %v282_v54 = vpop.eup %281  ;;  %v107_v56 = vmul.f32 0.6931472, %v280_v51 }
  0x40   :  { %v284_v58 = vpop.eup %283  ;;  %v116_v60 = vmul.f32 0.6931472, %v282_v54 }
  0x41   :  { %v113_v61 = vsel %vm112_vm4, %v110_v50, %v107_v56  ;;  %v125_v62 = vmul.f32 0.6931472, %v284_v58  ;;  %v176_v56 = vld [vmem:[#allocation2] sm:$0x7] }
  0x42   :  { %v122_v63 = vsel %vm121_vm5, %v119_v53, %v116_v60  ;;  %v132_v0 = vadd.f32 %v113_v61, %v90_v52 }
  0x43   :  { %v131_v2 = vsel %vm130_vm6, %v128_v57, %v125_v62  ;;  %v133_v3 = vadd.f32 %v122_v63, %v91_v55 }
  0x44   :  { %v134_v4 = vadd.f32 %v131_v2, %v92_v59  ;;  %v135_v5 = vsub.f32 0.0, %v132_v0 }
  0x45   :  { %v136_v6 = vsub.f32 0.0, %v133_v3 }
  0x46   :  { %v137_v7 = vsub.f32 0.0, %v134_v4  ;;  %v138_v8 = vmul.f32 1.442695, %v135_v5 }
  0x47   :  { %v140_v9 = vmul.f32 1.442695, %v136_v6 }
  0x48   :  { %285 = vpow2.f32 %v138_v8  ;;  %v142_v10 = vmul.f32 1.442695, %v137_v7 }
  0x49   :  { %287 = vpow2.f32 %v140_v9 }
  0x4a   :  { %289 = vpow2.f32 %v142_v10 }
  0x55   :  { %v286_v11 = vpop.eup %285 }
  0x56   :  { %v288_v12 = vpop.eup %287  ;;  %v144_v13 = vsub.f32 1.0, %v286_v11 }
  0x57   :  { %v290_v14 = vpop.eup %289  ;;  %v145_v16 = vsub.f32 1.0, %v288_v12 }
  0x58   :  { %v146_v17 = vsub.f32 1.0, %v290_v14  ;;  %v147_v18 = vmul.f32 %v144_v13, %v144_v13 }
  0x59   :  { %v148_v19 = vmul.f32 %v145_v16, %v145_v16 }
  0x5a   :  { %v149_v21 = vmul.f32 %v146_v17, %v146_v17  ;;  %v150_v22 = vmul.f32 %v147_v18, %v132_v0 }
  0x5b   :  { %v151_v24 = vmul.f32 %v148_v19, %v133_v3 }
  0x5c   :  { %v152_v26 = vmul.f32 %v149_v21, %v134_v4  ;;  %v154_v27 = vsel %vm153_vm7, %v150_v22, 0.0 }
  0x5d   :  { %v155_v28 = vrot.slane %v154_v27, 4  ;;  %v161_v29 = vsel %vm153_vm7, %v151_v24, 0.0 }
  0x5e   :  { %v162_v30 = vrot.slane %v161_v29, 4  ;;  %v169_v31 = vsel %vm168_vm8, %v152_v26, 0.0 }
  0x5f   :  { %v156_v32 = vadd.f32 %v155_v28, %v154_v27  ;;  %v170_v33 = vrot.slane %v169_v31, 4 }
  0x60   :  { %v163_v36 = vadd.f32 %v162_v30, %v161_v29 }
  0x61   :  { %v157_v37 = vrot.slane %v156_v32, 2  ;;  %v171_v38 = vadd.f32 %v170_v33, %v169_v31 }
  0x62   :  { %v164_v39 = vrot.slane %v163_v36, 2 }
  0x63   :  { %v158_v40 = vadd.f32 %v157_v37, %v156_v32  ;;  %v172_v41 = vrot.slane %v171_v38, 2 }
  0x64   :  { %v165_v43 = vadd.f32 %v164_v39, %v163_v36 }
  0x65   :  { %v159_v44 = vrot.slane %v158_v40, 1  ;;  %v173_v45 = vadd.f32 %v172_v41, %v171_v38 }
  0x66   :  { %v166_v46 = vrot.slane %v165_v43, 1 }
  0x67   :  { %v160_v47 = vadd.f32 %v159_v44, %v158_v40  ;;  %v174_v48 = vrot.slane %v173_v45, 1 }
  0x68   :  { %v167_v50 = vadd.f32 %v166_v46, %v165_v43 }
  0x69   :  { %v175_v51 = vadd.f32 %v174_v48, %v173_v45 }
  0x6a   :  { %v180_v52 = vcombine.low %v160_v47, %v167_v50 }
  0x6b   :  { %v194_v53 = vrot.slane %v175_v51, %v186_v49 }
  0x6c   :  { %v187_v54 = vrot.slane %v180_v52, %v186_v49 }
  0x6e   :  { %v195_v55 = vcombine.low %v187_v54, %v194_v53 }
  0x70   :  { %v202_v57 = vrot.slane %v195_v55, %v186_v49 }
  0x72   :  { %v204_v58 = vadd.f32 %v202_v57, %v176_v56 }
  0x74   :  { %209 = vst.msk [vmem:[#allocation2] sm:$0x7] %vm383_vm0, %v204_v58 }
  0x7b   :  { %v213_v59 = vld [vmem:[#allocation2] sm:$0x7] }
  0x7c   :  { %v218_v60 = vrot.slane %v213_v59, %v65_v20  ;;  %v222_v61 = vrot.slane %v213_v59, %v69_v23  ;;  %v226_v62 = vrot.slane %v213_v59, %v73_v25 }
  0x7e   :  { %v231_v63 = vsel %vm230_vm9, %v218_v60, 0.0  ;;  %v232_v0 = vsel %vm230_vm9, %v222_v61, 0.0  ;;  %v235_v2 = vsel %vm234_vm10, %v226_v62, 0.0 }
  0x7f   :  { %v233_v3 = vadd.f32 %v232_v0, %v231_v63 }
  0x81   :  { %v236_v4 = vadd.f32 %v235_v2, %v233_v3 }
  0x83   :  { %237 = vadd.xlane.f32.xlu0 %v236_v4 }
 0x10c   :  { %v238_v1 = vpop.xlane.xlu0 %237 }
 0x10d   :  { %v239_v5 = vrot.slane %v238_v1, 4 }
 0x10f   :  { %v240_v6 = vadd.f32 %v239_v5, %v238_v1 }
 0x111   :  { %v241_v7 = vrot.slane %v240_v6, 2 }
 0x113   :  { %v242_v8 = vadd.f32 %v241_v7, %v240_v6 }
 0x115   :  { %v243_v9 = vrot.slane %v242_v8, 1 }
 0x117   :  { %v244_v10 = vadd.f32 %v243_v9, %v242_v8 }
 0x119   :  { %266 = vpush %v244_v10 }
 0x14a   :  { %s267_s20 = spop %266 }
 0x14b   :  { %s246_s21 = smul.f32 0.00055555557, %s267_s20 }
 0x14d   :  { %v247_v15 = vstv %s246_s21 }
 0x14e   :  { %249 = vst [vmem:[#allocation8] sm:$0xff] %v247_v15 }
 0x14f   :  { %342 = shalt.err (!%p339_p0)
}
 0x150   :  { %259 = dma.vmem_to_hbm [thread:$0]  %s257_s1, 128, %s423_s2, [#allocation5]  }
 0x151   :  { %355 = dma.done.wait [#allocation5], 128  }
 0x152   :  { %356 = vsyncadd [#allocation5], 4294967168 }
 0x153   :  { %263 = vsyncpa [#allocation4], 1 }
 0x154   :  { %264 = vsyncpa [#allocation7], 1 }
 0x155   :  { %265 = vsyncpa [#allocation5], 1 }

</bundles_post_ra>
